<compile_context>
chip_gen: v6e
topology: v6e:2x2x1
jax: 0.10.0
libtpu: 0.0.40
codegen_flags: <defaults>
</compile_context>

<pallas_src>
import functools

import jax
import jax.numpy as jnp
from jax import lax
from jax.experimental import pallas as pl
from jax.experimental.pallas import tpu as pltpu


_LANE = 128
_ACC_SUBLANES = 8                        # f32 accumulator tile rows
_TARGET_TILE_BYTES = 2 * 1024 * 1024     # per input per grid step
_SMALL_BATCH_THRESHOLD = 64 * 1024       # below this, fused XLA reduce wins
_VMEM_LIMIT_BYTES = 32 * 1024 * 1024     # lifts v5e's 16 MiB default; <= physical everywhere


def _cdiv(a, b):
    return -(-a // b)


def _round_up(x, m):
    return _cdiv(x, m) * m


@functools.lru_cache(maxsize=1)
def _num_tensorcores():
    # v7x has 2 TensorCores per chip; v5e/v6e have 1.
    # TODO(synk): verify "parallel" dimension_semantics actually core-shards on v7x;
    # switch that axis to pltpu.CORE_PARALLEL / pl.core_map if it does not.
    try:
        kind = jax.devices()[0].device_kind.lower()
    except Exception:
        return 1
    return 2 if "7" in kind else 1


def _make_sum_kernel(rows, row_block, inner, needs_mask):
    """Per parallel slice, accumulate raw sums of both inputs into a resident
    lane-dense (8, 128) f32 output block."""

    def kernel(recon_ref, kl_ref, sum_r_ref, sum_k_ref):
        p = pl.program_id(0)
        k = pl.program_id(1)

        @pl.when(k == 0)
        def _init():
            sum_r_ref[...] = jnp.zeros_like(sum_r_ref)
            sum_k_ref[...] = jnp.zeros_like(sum_k_ref)

        r = recon_ref[...].astype(jnp.float32)   # (row_block, 128)
        c = kl_ref[...].astype(jnp.float32)

        if needs_mask:
            # Logical (unclamped) first row of this tile; rows beyond `rows`
            # (partial edge tile or phantom tile) are zeroed before summing.
            row_start = (p * inner + k) * row_block
            row_ids = lax.broadcasted_iota(jnp.int32, (row_block, 1), 0)
            mask = row_ids < (rows - row_start)
            r = jnp.where(mask, r, 0.0)
            c = jnp.where(mask, c, 0.0)

        # Reduce row_block -> 8 sublane rows (tile-aligned reshape, pure VPU adds).
        sum_r_ref[...] += jnp.sum(
            r.reshape(row_block // _ACC_SUBLANES, _ACC_SUBLANES, _LANE), axis=0)
        sum_k_ref[...] += jnp.sum(
            c.reshape(row_block // _ACC_SUBLANES, _ACC_SUBLANES, _LANE), axis=0)

    return kernel


def _pallas_partial_sums(recon2d, kl2d, rows, row_block, inner, total_blocks, num_parallel):
    needs_mask = (rows % row_block != 0) or (num_parallel * inner != total_blocks)
    kernel = _make_sum_kernel(rows, row_block, inner, needs_mask)

    def in_idx(p, k):
        # Clamp phantom trailing blocks onto the last real block; the in-kernel
        # mask zeroes their contribution.
        return (jnp.minimum(p * inner + k, total_blocks - 1), 0)

    itemsize = jnp.dtype(recon2d.dtype).itemsize
    bytes_accessed = (2 * rows * _LANE * itemsize
                      + 2 * num_parallel * _ACC_SUBLANES * _LANE * 4)

    return pl.pallas_call(
        kernel,
        out_shape=(
            jax.ShapeDtypeStruct((num_parallel * _ACC_SUBLANES, _LANE), jnp.float32),
            jax.ShapeDtypeStruct((num_parallel * _ACC_SUBLANES, _LANE), jnp.float32),
        ),
        grid_spec=pltpu.PrefetchScalarGridSpec(
            num_scalar_prefetch=0,
            grid=(num_parallel, inner),
            in_specs=[
                pl.BlockSpec((row_block, _LANE), in_idx),
                pl.BlockSpec((row_block, _LANE), in_idx),
            ],
            out_specs=(
                pl.BlockSpec((_ACC_SUBLANES, _LANE), lambda p, k: (p, 0)),
                pl.BlockSpec((_ACC_SUBLANES, _LANE), lambda p, k: (p, 0)),
            ),
        ),
        compiler_params=pltpu.CompilerParams(
            dimension_semantics=("parallel", "arbitrary"),
            vmem_limit_bytes=_VMEM_LIMIT_BYTES,
        ),
        cost_estimate=pl.CostEstimate(
            flops=4 * rows * _LANE, transcendentals=0, bytes_accessed=bytes_accessed),
    )(recon2d, kl2d)


@functools.partial(jax.jit, static_argnames=("force_kernel",))
def elbo_loss(recon_log_prob, kl_divergence, kl_weight=1.0,
              reconstruction_weight=1.0, *, force_kernel=False):
    """-ELBO = mean(-rw * recon_log_prob + kw * kl_divergence), scalar float32."""
    if recon_log_prob.shape != kl_divergence.shape:
        raise ValueError("recon_log_prob and kl_divergence must have the same shape")
    for name, w in (("kl_weight", kl_weight),
                    ("reconstruction_weight", reconstruction_weight)):
        if isinstance(w, (int, float)) and w < 0:
            raise ValueError(f"{name} must be a non-negative number.")

    recon = jnp.ravel(recon_log_prob)
    kl = jnp.ravel(kl_divergence)
    b = recon.shape[0]

    rw = jnp.asarray(reconstruction_weight, jnp.float32)
    kw = jnp.asarray(kl_weight, jnp.float32)

    if (not force_kernel) and b < _SMALL_BATCH_THRESHOLD:
        # 3-op mem-bound reduce: XLA's fused reduction beats pallas_call overhead.
        return jnp.mean(-rw * recon.astype(jnp.float32) + kw * kl.astype(jnp.float32))

    # Keep low-precision inputs native on the wire (halves HBM traffic).
    wire_dtype = jnp.promote_types(recon.dtype, kl.dtype)
    if (not jnp.issubdtype(wire_dtype, jnp.floating)) or jnp.dtype(wire_dtype).itemsize > 4:
        wire_dtype = jnp.dtype(jnp.float32)
    recon_w = recon.astype(wire_dtype)
    kl_w = kl.astype(wire_dtype)

    itemsize = jnp.dtype(wire_dtype).itemsize
    sublane_mult = 32 // itemsize          # 8 f32 / 16 bf16 / 32 int8-fp8

    rows = b // _LANE
    tail = b - rows * _LANE

    if rows == 0:
        # force_kernel with a sub-128 batch: pad up to one minimal tile (the
        # zero pad contributes nothing to the sums; divisor stays the true B).
        pad = sublane_mult * _LANE - b
        recon_w = jnp.pad(recon_w, (0, pad))
        kl_w = jnp.pad(kl_w, (0, pad))
        rows, tail = sublane_mult, 0

    main = rows * _LANE
    if tail:
        # Only the 128-aligned prefix goes through the kernel; the <128-element
        # tail is reduced below with plain jnp (no full padded copy of the input).
        recon_main, kl_main = recon_w[:main], kl_w[:main]
    else:
        recon_main, kl_main = recon_w, kl_w    # full-array reshape is a free bitcast
    recon2d = recon_main.reshape(rows, _LANE)
    kl2d = kl_main.reshape(rows, _LANE)

    num_parallel = _num_tensorcores()
    max_row_block = max(sublane_mult, _TARGET_TILE_BYTES // (_LANE * itemsize))
    row_block = min(max_row_block, _round_up(_cdiv(rows, num_parallel), sublane_mult))
    row_block = max(row_block, sublane_mult)
    total_blocks = _cdiv(rows, row_block)
    num_parallel = max(1, min(num_parallel, total_blocks))
    inner = _cdiv(total_blocks, num_parallel)

    sum_r_tiles, sum_k_tiles = _pallas_partial_sums(
        recon2d, kl2d, rows, row_block, inner, total_blocks, num_parallel)

    sum_r = jnp.sum(sum_r_tiles)
    sum_k = jnp.sum(sum_k_tiles)
    if tail:
        sum_r = sum_r + jnp.sum(recon_w[main:].astype(jnp.float32))
        sum_k = sum_k + jnp.sum(kl_w[main:].astype(jnp.float32))

    return (-rw * sum_r + kw * sum_k) / b


if __name__ == "__main__":
    key = jax.random.PRNGKey(0)
    k1, k2, k3, k4, k5, k6 = jax.random.split(key, 6)

    kl_w = 0.5
    rec_w = 1.0

    def ref_loss(r, c, kw=kl_w, rw=rec_w):
        return jnp.mean(-rw * r.astype(jnp.float32) + kw * c.astype(jnp.float32))

    # --- Test 1: tiny batch (B=8), f32, forced through the kernel (pad-to-one-tile path).
    B1 = 8
    r1 = -jnp.abs(jax.random.normal(k1, (B1,), dtype=jnp.float32)) * 3.0
    c1 = jnp.abs(jax.random.normal(k2, (B1,), dtype=jnp.float32))
    l1 = jax.block_until_ready(elbo_loss(r1, c1, kl_w, rec_w, force_kernel=True))
    assert jnp.allclose(l1, ref_loss(r1, c1), rtol=1e-5, atol=1e-5), (l1, ref_loss(r1, c1))

    # --- Test 2: ragged batch (B=2500), bf16 kept native on the wire, kernel path.
    B2 = 2500
    r2 = (-jnp.abs(jax.random.normal(k3, (B2,), dtype=jnp.float32)) * 3.0).astype(jnp.bfloat16)
    c2 = jnp.abs(jax.random.normal(k4, (B2,), dtype=jnp.float32)).astype(jnp.bfloat16)
    l2 = jax.block_until_ready(elbo_loss(r2, c2, kl_w, rec_w, force_kernel=True))
    assert jnp.allclose(l2, ref_loss(r2, c2), rtol=1e-3, atol=1e-3), (l2, ref_loss(r2, c2))

    # --- Test 3: multi-tile accumulation (several reduction steps + ragged edge tile),
    #     then KL-annealing reuse of the same compiled kernel (weight is a dynamic arg).
    B3 = 1_048_897
    r3 = -jnp.abs(jax.random.normal(k5, (B3,), dtype=jnp.float32)) * 3.0
    c3 = jnp.abs(jax.random.normal(k6, (B3,), dtype=jnp.float32))
    l3 = jax.block_until_ready(elbo_loss(r3, c3, kl_w, rec_w, force_kernel=True))
    assert jnp.allclose(l3, ref_loss(r3, c3), rtol=1e-3, atol=1e-3), (l3, ref_loss(r3, c3))

    annealed = 0.05
    l3b = jax.block_until_ready(elbo_loss(r3, c3, annealed, rec_w, force_kernel=True))
    ref3b = ref_loss(r3, c3, kw=annealed)
    assert jnp.allclose(l3b, ref3b, rtol=1e-3, atol=1e-3), (l3b, ref3b)

    print("KERNEL_OK")
</pallas_src>

<mosaic_0001>
module attributes {stable_mosaic.version = 11 : i64} {
  func.func @kernel(%arg0: i32, %arg1: i32, %arg2: memref<8x128xf32, #tpu.memory_space<vmem>>, %arg3: memref<8x128xf32, #tpu.memory_space<vmem>>, %arg4: memref<8x128xf32, #tpu.memory_space<vmem>>, %arg5: memref<8x128xf32, #tpu.memory_space<vmem>>) attributes {dimension_semantics = [#tpu.dimension_semantics<parallel>, #tpu.dimension_semantics<arbitrary>], iteration_bounds = array<i64: 1, 1>, scalar_prefetch = 0 : i64, scratch_operands = 0 : i64, tpu.core_type = #tpu.core_type<tc>, window_params = [{transform_indices = @transform_0, window_bounds = array<i64: 8, 128>}, {transform_indices = @transform_1, window_bounds = array<i64: 8, 128>}, {transform_indices = @transform_2, window_bounds = array<i64: 8, 128>}, {transform_indices = @transform_3, window_bounds = array<i64: 8, 128>}]} {
    %c0_i32 = arith.constant 0 : i32
    %0 = arith.cmpi eq, %arg1, %c0_i32 : i32
    %1 = arith.extui %0 : i1 to i32
    %c0_i32_0 = arith.constant 0 : i32
    %2 = arith.cmpi ne, %1, %c0_i32_0 : i32
    scf.if %2 {
      %cst_13 = arith.constant 0.000000e+00 : f32
      %15 = vector.broadcast %cst_13 : f32 to vector<8x128xf32>
      %c0_14 = arith.constant 0 : index
      %c0_15 = arith.constant 0 : index
      %16 = vector.load %arg4[%c0_14, %c0_15] : memref<8x128xf32, #tpu.memory_space<vmem>>, vector<8x128xf32>
      tpu.vector_store %arg4[%c0_14, %c0_15], %15 {strides = array<i32>} : memref<8x128xf32, #tpu.memory_space<vmem>>, vector<8x128xf32>,
      %cst_16 = arith.constant 0.000000e+00 : f32
      %17 = vector.broadcast %cst_16 : f32 to vector<8x128xf32>
      %c0_17 = arith.constant 0 : index
      %c0_18 = arith.constant 0 : index
      %18 = vector.load %arg5[%c0_17, %c0_18] : memref<8x128xf32, #tpu.memory_space<vmem>>, vector<8x128xf32>
      tpu.vector_store %arg5[%c0_17, %c0_18], %17 {strides = array<i32>} : memref<8x128xf32, #tpu.memory_space<vmem>>, vector<8x128xf32>,
    } else {
    }
    %c0 = arith.constant 0 : index
    %c0_1 = arith.constant 0 : index
    %3 = vector.load %arg2[%c0, %c0_1] : memref<8x128xf32, #tpu.memory_space<vmem>>, vector<8x128xf32>
    %c0_2 = arith.constant 0 : index
    %c0_3 = arith.constant 0 : index
    %4 = vector.load %arg3[%c0_2, %c0_3] : memref<8x128xf32, #tpu.memory_space<vmem>>, vector<8x128xf32>
    %c0_4 = arith.constant 0 : index
    %c0_5 = arith.constant 0 : index
    %5 = vector.load %arg4[%c0_4, %c0_5] : memref<8x128xf32, #tpu.memory_space<vmem>>, vector<8x128xf32>
    %6 = vector.shape_cast %3 : vector<8x128xf32> to vector<1x8x128xf32>
    %cst = arith.constant dense<0.000000e+00> : vector<8x128xf32>
    %7 = vector.multi_reduction <add>, %6, %cst [0] : vector<1x8x128xf32> to vector<8x128xf32>
    %8 = arith.addf %5, %7 : vector<8x128xf32>
    %c0_6 = arith.constant 0 : index
    %c0_7 = arith.constant 0 : index
    %9 = vector.load %arg4[%c0_6, %c0_7] : memref<8x128xf32, #tpu.memory_space<vmem>>, vector<8x128xf32>
    tpu.vector_store %arg4[%c0_6, %c0_7], %8 {strides = array<i32>} : memref<8x128xf32, #tpu.memory_space<vmem>>, vector<8x128xf32>,
    %c0_8 = arith.constant 0 : index
    %c0_9 = arith.constant 0 : index
    %10 = vector.load %arg5[%c0_8, %c0_9] : memref<8x128xf32, #tpu.memory_space<vmem>>, vector<8x128xf32>
    %11 = vector.shape_cast %4 : vector<8x128xf32> to vector<1x8x128xf32>
    %cst_10 = arith.constant dense<0.000000e+00> : vector<8x128xf32>
    %12 = vector.multi_reduction <add>, %11, %cst_10 [0] : vector<1x8x128xf32> to vector<8x128xf32>
    %13 = arith.addf %10, %12 : vector<8x128xf32>
    %c0_11 = arith.constant 0 : index
    %c0_12 = arith.constant 0 : index
    %14 = vector.load %arg5[%c0_11, %c0_12] : memref<8x128xf32, #tpu.memory_space<vmem>>, vector<8x128xf32>
    tpu.vector_store %arg5[%c0_11, %c0_12], %13 {strides = array<i32>} : memref<8x128xf32, #tpu.memory_space<vmem>>, vector<8x128xf32>,
    return
  }
  func.func @transform_0(%arg0: i32, %arg1: i32) -> (i32, i32) {
    %c1_i32 = arith.constant 1 : i32
    %0 = arith.muli %arg0, %c1_i32 : i32
    %1 = arith.addi %0, %arg1 : i32
    %c0_i32 = arith.constant 0 : i32
    %2 = arith.minsi %1, %c0_i32 : i32
    %c0_i32_0 = arith.constant 0 : i32
    %c0_i32_1 = arith.constant 0 : i32
    return %2, %c0_i32_0 : i32, i32
  }
  func.func @transform_1(%arg0: i32, %arg1: i32) -> (i32, i32) {
    %c1_i32 = arith.constant 1 : i32
    %0 = arith.muli %arg0, %c1_i32 : i32
    %1 = arith.addi %0, %arg1 : i32
    %c0_i32 = arith.constant 0 : i32
    %2 = arith.minsi %1, %c0_i32 : i32
    %c0_i32_0 = arith.constant 0 : i32
    %c0_i32_1 = arith.constant 0 : i32
    return %2, %c0_i32_0 : i32, i32
  }
  func.func @transform_2(%arg0: i32, %arg1: i32) -> (i32, i32) {
    %c0_i32 = arith.constant 0 : i32
    %c0_i32_0 = arith.constant 0 : i32
    return %arg0, %c0_i32 : i32, i32
  }
  func.func @transform_3(%arg0: i32, %arg1: i32) -> (i32, i32) {
    %c0_i32 = arith.constant 0 : i32
    %c0_i32_0 = arith.constant 0 : i32
    return %arg0, %c0_i32 : i32, i32
  }
}

</mosaic_0001>

<bundles_post_ra>
// kernel: elbo_loss.1
= control target key start
LH: loop header
LB: loop body
LE: loop exit
PB: predicated region body
PF: predicated region fallthrough
CT: control target
= control target key end

     0   :  { %s136_s0 = inlined_call_operand.vmem [shape: f32[8,128], index: 0, kind: input, shape index: {}]   ;;  %s137_s1 = inlined_call_operand.vmem [shape: f32[8,128], index: 1, kind: input, shape index: {}]   ;;  %s138_s2 = inlined_call_operand.vmem [shape: f32[8,128], index: 2, kind: output, shape index: {0}]   ;;  %s139_s3 = inlined_call_operand.vmem [shape: f32[8,128], index: 3, kind: output, shape index: {1}]  }
   0x1   :  { %v73_v0 = vld [vmem:[%s136_s0] sm:$0xff] }
   0x2   :  { %v74_v1 = vld [vmem:[%s137_s1] sm:$0xff]  ;;  %78 = vst [vmem:[%s138_s2] sm:$0xff] %v73_v0 }
   0x3   :  { %82 = vst [vmem:[%s139_s3] sm:$0xff] %v74_v1 }

</bundles_post_ra>
